<compile_context>
chip_gen: v5e
topology: v5e:2x2
jax: 0.10.0
libtpu: 0.0.40
codegen_flags: <defaults>
</compile_context>

<pallas_src>
import numpy as np

import jax
import jax.numpy as jnp
from jax.experimental import pallas as pl
from jax.experimental.pallas import tpu as pltpu

_LANES = 128
_MAX_BLOCK_ROWS = 2048  # multiple of 8; 2048*128*4B = 1 MiB per tile


def _clip_boxes_kernel(x_ref, lo_ref, hi_ref, o_ref):
    # x_ref: (block_rows, 128); lo_ref / hi_ref: (1, 128) broadcast rows.
    o_ref[...] = jnp.minimum(jnp.maximum(x_ref[...], lo_ref[...]), hi_ref[...])


def _bound_rows(height, width, dtype):
    """Per-lane clamp bounds; lane % 4 gives the coordinate (x1,y1,x2,y2)."""
    coord = np.arange(_LANES) % 4
    lo = np.where(coord <= 1, 0.0, -np.inf)
    hi = np.where(coord == 2, float(width - 1),
                  np.where(coord == 3, float(height - 1), np.inf))
    # NOTE: bounds are cast to the boxes dtype (matches torch.clamp in that
    # dtype); for bf16 inputs with large W/H this rounds like PyTorch would.
    return (lo.reshape(1, _LANES).astype(dtype),
            hi.reshape(1, _LANES).astype(dtype))


def _run_clip_kernel(slab, lo_row, hi_row):
    rows, lanes = slab.shape
    assert lanes == _LANES

    if rows <= 8:
        block_rows = rows  # block equals full dim: always a legal block shape
    else:
        # Aim for >=2 grid steps (feeds both v7x TensorCores), cap tile size.
        target = pl.cdiv(rows, 2)
        block_rows = min(_MAX_BLOCK_ROWS, ((target + 7) // 8) * 8)

    grid = (pl.cdiv(rows, block_rows),)
    itemsize = slab.dtype.itemsize

    return pl.pallas_call(
        _clip_boxes_kernel,
        out_shape=jax.ShapeDtypeStruct(slab.shape, slab.dtype),
        grid=grid,
        in_specs=[
            pl.BlockSpec((block_rows, _LANES), lambda i: (i, 0)),
            pl.BlockSpec((1, _LANES), lambda i: (0, 0)),
            pl.BlockSpec((1, _LANES), lambda i: (0, 0)),
        ],
        out_specs=pl.BlockSpec((block_rows, _LANES), lambda i: (i, 0)),
        compiler_params=pltpu.CompilerParams(
            dimension_semantics=("parallel",)),
        cost_estimate=pl.CostEstimate(
            flops=2 * rows * _LANES,
            transcendentals=0,
            bytes_accessed=2 * rows * _LANES * itemsize),
    )(slab, jnp.asarray(lo_row), jnp.asarray(hi_row))


def clip_boxes(boxes, img):
    """Pallas implementation of ClipBoxes.forward(boxes, img) (functional)."""
    B, N, C4 = boxes.shape
    assert C4 == 4, "boxes last dim must be 4 (x1, y1, x2, y2)"
    _, _, H, W = img.shape  # only the static height/width are used

    total = B * N * 4
    flat = boxes.reshape(-1)  # contiguous row-major: coord is fastest axis

    lo_row, hi_row = _bound_rows(H, W, boxes.dtype)

    rows_main = total // _LANES
    rem = total - rows_main * _LANES  # multiple of 4, < 128

    pieces = []
    if rows_main > 0:
        main = flat if rem == 0 else flat[: rows_main * _LANES]
        out_main = _run_clip_kernel(main.reshape(rows_main, _LANES),
                                    lo_row, hi_row)
        pieces.append(out_main.reshape(-1))
    if rem > 0:
        # Tiny (<128 element) tail handled with plain jnp instead of padding
        # and copying the whole tensor through HBM.
        tail = flat[rows_main * _LANES:]
        lo_t = jnp.asarray(lo_row[0, :rem])
        hi_t = jnp.asarray(hi_row[0, :rem])
        pieces.append(jnp.minimum(jnp.maximum(tail, lo_t), hi_t))

    out_flat = pieces[0] if len(pieces) == 1 else jnp.concatenate(pieces)
    return out_flat.reshape(B, N, 4)


def _reference_clip_boxes(boxes, img):
    _, _, H, W = img.shape
    x1 = jnp.maximum(boxes[:, :, 0], 0.0)
    y1 = jnp.maximum(boxes[:, :, 1], 0.0)
    x2 = jnp.minimum(boxes[:, :, 2], float(W - 1))
    y2 = jnp.minimum(boxes[:, :, 3], float(H - 1))
    return jnp.stack([x1, y1, x2, y2], axis=-1)


if __name__ == "__main__":
    key = jax.random.PRNGKey(0)
    k_boxes1, k_boxes2, k_img = jax.random.split(key, 3)

    C, H, W = 4, 16, 16
    img = jax.random.normal(k_img, (2, C, H, W), dtype=jnp.float32)

    # Case 1: lane-divisible common path (2*160*4 = 1280 = 10 rows of 128),
    # exercises a multi-step grid with a ragged final block (8 + 2 rows).
    boxes1 = jax.random.uniform(k_boxes1, (2, 160, 4), dtype=jnp.float32,
                                minval=-10.0, maxval=30.0)
    out1 = jax.block_until_ready(clip_boxes(boxes1, img))
    ref1 = _reference_clip_boxes(boxes1, img)
    assert out1.shape == boxes1.shape and out1.dtype == boxes1.dtype
    assert jnp.array_equal(out1, ref1), "mismatch vs reference (case 1)"

    # Case 2: non-divisible size (2*40*4 = 320 = 2 rows + 64-element tail),
    # exercises kernel + tiny jnp tail path.
    boxes2 = jax.random.uniform(k_boxes2, (2, 40, 4), dtype=jnp.float32,
                                minval=-10.0, maxval=30.0)
    out2 = jax.block_until_ready(clip_boxes(boxes2, img))
    ref2 = _reference_clip_boxes(boxes2, img)
    assert out2.shape == boxes2.shape and out2.dtype == boxes2.dtype
    assert jnp.array_equal(out2, ref2), "mismatch vs reference (case 2)"

    print("KERNEL_OK")
</pallas_src>

<mosaic_0001>
module attributes {stable_mosaic.version = 11 : i64} {
  func.func @_clip_boxes_kernel(%arg0: i32, %arg1: memref<8x128xf32, #tpu.memory_space<vmem>>, %arg2: memref<1x128xf32, #tpu.memory_space<vmem>>, %arg3: memref<1x128xf32, #tpu.memory_space<vmem>>, %arg4: memref<8x128xf32, #tpu.memory_space<vmem>>) attributes {dimension_semantics = [#tpu.dimension_semantics<parallel>], iteration_bounds = array<i64: 2>, scalar_prefetch = 0 : i64, scratch_operands = 0 : i64, tpu.core_type = #tpu.core_type<tc>, window_params = [{transform_indices = @transform_0, window_bounds = array<i64: 8, 128>}, {pipeline_mode = #tpu.pipeline_mode<synchronous>, transform_indices = @transform_1, window_bounds = array<i64: 1, 128>}, {pipeline_mode = #tpu.pipeline_mode<synchronous>, transform_indices = @transform_2, window_bounds = array<i64: 1, 128>}, {transform_indices = @transform_3, window_bounds = array<i64: 8, 128>}]} {
    %c0 = arith.constant 0 : index
    %c0_0 = arith.constant 0 : index
    %0 = vector.load %arg1[%c0, %c0_0] : memref<8x128xf32, #tpu.memory_space<vmem>>, vector<8x128xf32>
    %c0_1 = arith.constant 0 : index
    %c0_2 = arith.constant 0 : index
    %1 = vector.load %arg2[%c0_1, %c0_2] : memref<1x128xf32, #tpu.memory_space<vmem>>, vector<1x128xf32>
    %2 = vector.broadcast %1 : vector<1x128xf32> to vector<8x128xf32>
    %3 = arith.maximumf %0, %2 : vector<8x128xf32>
    %c0_3 = arith.constant 0 : index
    %c0_4 = arith.constant 0 : index
    %4 = vector.load %arg3[%c0_3, %c0_4] : memref<1x128xf32, #tpu.memory_space<vmem>>, vector<1x128xf32>
    %5 = vector.broadcast %4 : vector<1x128xf32> to vector<8x128xf32>
    %6 = arith.minimumf %3, %5 : vector<8x128xf32>
    %c0_5 = arith.constant 0 : index
    %c0_6 = arith.constant 0 : index
    %7 = vector.load %arg4[%c0_5, %c0_6] : memref<8x128xf32, #tpu.memory_space<vmem>>, vector<8x128xf32>
    tpu.vector_store %arg4[%c0_5, %c0_6], %6 {strides = array<i32>} : memref<8x128xf32, #tpu.memory_space<vmem>>, vector<8x128xf32>,
    return
  }
  func.func @transform_0(%arg0: i32) -> (i32, i32) {
    %c0_i32 = arith.constant 0 : i32
    %c0_i32_0 = arith.constant 0 : i32
    return %arg0, %c0_i32 : i32, i32
  }
  func.func @transform_1(%arg0: i32) -> (i32, i32) {
    %c0_i32 = arith.constant 0 : i32
    %c0_i32_0 = arith.constant 0 : i32
    %c0_i32_1 = arith.constant 0 : i32
    return %c0_i32, %c0_i32_0 : i32, i32
  }
  func.func @transform_2(%arg0: i32) -> (i32, i32) {
    %c0_i32 = arith.constant 0 : i32
    %c0_i32_0 = arith.constant 0 : i32
    %c0_i32_1 = arith.constant 0 : i32
    return %c0_i32, %c0_i32_0 : i32, i32
  }
  func.func @transform_3(%arg0: i32) -> (i32, i32) {
    %c0_i32 = arith.constant 0 : i32
    %c0_i32_0 = arith.constant 0 : i32
    return %arg0, %c0_i32 : i32, i32
  }
}

</mosaic_0001>

<bundles_post_ra>
// kernel: tpu_custom_call.1
= control target key start
LH: loop header
LB: loop body
LE: loop exit
PB: predicated region body
PF: predicated region fallthrough
CT: control target
= control target key end

     0   :  { %8 = vsyncpa [#allocation3], 0  ;;  %s678_s0 = inlined_call_operand.hbm [shape: f32[10,128], index: 0, kind: input, shape index: {}]   ;;  %s679_s1 = inlined_call_operand.hbm [shape: f32[1,128], index: 1, kind: input, shape index: {}]   ;;  %s680_s2 = inlined_call_operand.vmem [shape: f32[1,128], index: 2, kind: input, shape index: {}]   ;;  %s681_s3 = inlined_call_operand.hbm [shape: f32[10,128], index: 3, kind: output, shape index: {}]  }
   0x1   :  { %10 = vsyncpa [#allocation3 + $0x1], 0 }
   0x2   :  { %11 = vsyncpa [#allocation6], 0 }
   0x3   :  { %12 = vsyncpa [#allocation4], 0 }
   0x4   :  { %14 = vsyncpa [#allocation4 + $0x1], 0  ;;  %s537_s12 = smov 0   ;;  %s539_s13 = smov 0  }
   0x5   :  { %s541_s14 = smov 0   ;;  %s543_s15 = smov 0  }
   0x6 LB: > { %s558_s16 = sadd.s32 4294967295, %s514_s15   ;;  %s311_s17 = sadd.s32 4294967294, %s514_s15   ;;  %s514_s15 = sphi %s543_s15, %s691_s15   ;;  %s510_s14 = sphi %s541_s14, %s690_s14   ;;  %s506_s13 = sphi %s539_s13, %s689_s13   ;;  %s502_s12 = sphi %s537_s12, %s688_s12  }
   0x7   : > { %p40_p0 = scmp.ne.s32.totalorder %s506_s13, %s502_s12  ;;  %p41_p1 = scmp.eq.s32.totalorder %s558_s16, 0 }
   0x8   : > { %p106_p2 = scmp.eq.s32.totalorder %s558_s16, 1  ;;  %p112_p3 = scmp.eq.s32.totalorder %s311_s17, 1 }
   0x9   : > { %p567_p4 = por %p41_p1, %p40_p0  ;;  %p312_p5 = scmp.ge.s32.totalorder %s514_s15, 1 }
   0xa   : > { %p572_p6 = por %p112_p3, %p40_p0  ;;  %p119_p7 = scmp.lt.s32.totalorder %s514_s15, 3 }
   0xb   : > { %s131_s22 = sshll.u32 %s679_s1, 4  ;;  %s516_s24 = smov [#allocation5]   ;;  %s132_s22 = int_to_ptr.hbm [resolvable:$true] %s131_s22 }
   0xc   : > { %p580_p8 = pnand %p312_p5, %p119_p7  ;;  %s133_s25 = sshll.u32 %s516_s24, 4  ;;  %s134_s25 = int_to_ptr.vmem [resolvable:$true] %s133_s25 }
   0xd   : > { %s590_s26 = sadd.s32 1, %s514_s15   ;;  %s27_s27 = sadd.s32 1, %s510_s14 }
   0xe   : > { %p333_p10 = pneg %p580_p8  ;;  %s24_s28 = ssub.s32 %s514_s15, %s590_s26 }
   0xf   : > { %p25_p12 = scmp.eq.s32.totalorder %s24_s28, 0  ;;  %p34_p13 = scmp.ne.s32.totalorder %s510_s14, %s506_s13 }
  0x10   : > { %p334_p11 = pnand %p333_p10, %p41_p1  ;;  %p35_p0 = scmp.eq.s32.totalorder %s514_s15, 0 }
  0x11   : > { %s599_s29 = scalar_select %p25_p12, %s510_s14, %s27_s27  }
  0x12   : > { %336 = dma.hbm_to_vmem [thread:$0]  (!%p334_p11), %s132_s22, 16, %s134_s25, [#allocation6]  }
  0x13   : > { %p603_p3 = por %p106_p2, %p34_p13  ;;  %p346_p5 = scmp.lt.s32.totalorder %s514_s15, 2 }
  0x14   : > { %s147_s4 = sand.u32 1, %s510_s14   ;;  %s316_s5 = sshll.u32 %s514_s15, 3 }
  0x15   : > { %p36_p7 = por %p35_p0, %p34_p13  ;;  %s315_s6 = sshll.u32 %s147_s4, 3 }
  0x16   : > { %s155_s9 = scalar_lea.hbm %s678_s0, %s316_s5  ;;  %s151_s11 = scalar_lea.vmem [#allocation2], %s315_s6 }
  0x17   : > { %s157_s10 = sshll.u32 %s155_s9, 4  ;;  %s159_s17 = sshll.u32 %s151_s11, 4  ;;  %s158_s10 = int_to_ptr.hbm [resolvable:$true] %s157_s10  ;;  %s160_s17 = int_to_ptr.vmem [resolvable:$true] %s159_s17 }
  0x18   : > { %p613_p10 = pnand %p346_p5, %p36_p7  ;;  %s148_s21 = scalar_lea.sflag [#allocation3], %s147_s4 }
  0x19   : > { %s414_s22 = sshra.s32 %s158_s10, 4  ;;  %s421_s28 = scalar_lea.hbm %s678_s0, 16  ;;  %s415_s22 = int_to_ptr.hbm [resolvable:$true] %s414_s22 }
  0x1a   : > { %s416_s24 = scalar_lea.hbm %s415_s22, 8  ;;  %p418_p11 = pneg %p613_p10 }
  0x1b   : > { %p417_p2 = scmp.ne.s32.totalorder %s415_s22, %s416_s24  ;;  %p422_p0 = scmp.lt.s32.totalorder %s415_s22, %s678_s0 }
  0x1c   : > { %p423_p5 = scmp.lt.s32.totalorder %s421_s28, %s416_s24 }
  0x1d   : > { %p419_p12 = pnand %p418_p11, %p417_p2 }
  0x1e   : > { %p424_p7 = por %p423_p5, %p422_p0 }
  0x1f   : > { %p420_p13 = pneg %p419_p12 }
  0x21   : > { %p425_p9 = pnand %p424_p7, %p420_p13 }
  0x23   : > { %428 = shalt.err (!%p425_p9)
}
  0x24   : > { %340 = dma.hbm_to_vmem [thread:$0]  (!%p613_p10), %s158_s10, 128, %s160_s17, %s148_s21  }
  0x25   : > { %168 = sbr.rel (%p580_p8) target bundleno = 60 (0x3c), region = 32  ;;  %s630_s4 = sand.u32 (!%p580_p8), 1, %s506_s13  }
  0x26   : > { %s318_s7 = sshll.u32 (!%p580_p8), %s630_s4, 3  ;;  %s171_s8 = scalar_lea.sflag (!%p580_p8), [#allocation3], %s630_s4 }
  0x27   : > { %s174_s9 = scalar_lea.vmem (!%p580_p8), [#allocation2], %s318_s7 }
  0x2a   : > { %489 = dma.done.wait (%p567_p4), %s171_s8, 128  }
  0x2b   : > { %491 = vsyncadd (%p567_p4), %s171_s8, 4294967168 }
  0x2c   : > { %493 = dma.done.wait (%p41_p1), [#allocation6], 16  }
  0x2d   : > { %495 = vsyncadd (%p41_p1), [#allocation6], 4294967280  ;;  %s322_s23 = sshll.u32 %s558_s16, 3  ;;  %v203_v0 = vld [vmem:[%s174_s9] sm:$0xff]  ;;  %v382_v1 = vld [vmem:[#allocation5] ss:$0 sm:$0xff] }
  0x2e   : > { %s226_s17 = scalar_lea.hbm %s681_s3, %s322_s23  ;;  %v383_v2 = vld [vmem:[%s680_s2] ss:$0 sm:$0xff]  ;;  %s202_s18 = scalar_lea.vmem [#allocation7], %s318_s7  ;;  %v208_v3 = vmax.f32 %v203_v0, %v382_v1 }
  0x2f   : > { %s228_s22 = sshll.u32 %s202_s18, 4  ;;  %s230_s24 = sshll.u32 %s226_s17, 4  ;;  %s229_s22 = int_to_ptr.vmem [resolvable:$true] %s228_s22  ;;  %s231_s24 = int_to_ptr.hbm [resolvable:$true] %s230_s24 }
  0x30   : > { %v213_v4 = vmin.f32 %v208_v3, %v383_v2  ;;  %s216_s16 = scalar_lea.sflag [#allocation4], %s630_s4  ;;  %s458_s25 = sshra.s32 %s231_s24, 4  ;;  %s459_s25 = int_to_ptr.hbm [resolvable:$true] %s458_s25 }
  0x31   : > { %s460_s27 = scalar_lea.hbm %s459_s25, 8  ;;  %s464_s6 = scalar_lea.hbm %s681_s3, 16 }
  0x32   : > { %214 = vst [vmem:[%s202_s18] sm:$0xff] %v213_v4  ;;  %p461_p1 = scmp.ne.s32.totalorder %s459_s25, %s460_s27  ;;  %p465_p9 = scmp.lt.s32.totalorder %s459_s25, %s681_s3 }
  0x33   : > { %p466_p10 = scmp.lt.s32.totalorder %s464_s6, %s460_s27 }
  0x34   : > { %p462_p4 = pnand %p461_p1, %p603_p3 }
  0x35   : > { %p467_p2 = por %p466_p10, %p465_p9 }
  0x36   : > { %p463_p8 = pneg %p462_p4 }
  0x38   : > { %p468_p11 = pnand %p467_p2, %p463_p8 }
  0x3a   : > { %471 = shalt.err (!%p468_p11)
}
  0x3b   : > { %331 = dma.vmem_to_hbm [thread:$0]  (%p603_p3), %s229_s22, 128, %s231_s24, %s216_s16  }
  0x3c PF: > { %s242_s4 = sand.u32 1, %s502_s12   ;;  %p687_p12 = scmp.ge.s32.totalorder %s514_s15, 2 }
  0x3d   : > { %s243_s9 = scalar_lea.sflag [#allocation4], %s242_s4 }
  0x3e   : > { %p342_p13 = pnand %p687_p12, %p572_p6 }
  0x40   : > { %p343_p0 = pneg %p342_p13 }
  0x42   : > { %497 = dma.done.wait (%p343_p0), %s243_s9, 128  }
  0x43   : > { %499 = vsyncadd (%p343_p0), %s243_s9, 4294967168  ;;  %p17_p5 = scmp.ge.s32.totalorder %s590_s26, 4   ;;  %s688_s12 = smov %s506_s13 }
  0x44   : > { %s689_s13 = smov %s510_s14  ;;  %s690_s14 = smov %s599_s29 }
  0x45   : > { %s691_s15 = smov %s590_s26  ;;  %19 = sbr.rel (!%p17_p5) target bundleno = 6 (0x6), region = 81 }
  0x4a   :  { %249 = vsyncpa [#allocation3], 1 }
  0x4b   :  { %251 = vsyncpa [#allocation3 + $0x1], 1 }
  0x4c   :  { %252 = vsyncpa [#allocation6], 1 }
  0x4d   :  { %253 = vsyncpa [#allocation4], 1 }
  0x4e   :  { %255 = vsyncpa [#allocation4 + $0x1], 1 }

</bundles_post_ra>
